<compile_context>
chip_gen: v6e
topology: v6e:2x2x1
jax: 0.10.0
libtpu: 0.0.40
codegen_flags: <defaults>
</compile_context>

<pallas_src>
import numpy as np
import jax
import jax.numpy as jnp
from jax.experimental import pallas as pl
from jax.experimental.pallas import tpu as pltpu


LANE = 384  # 3 coordinates * 128 lanes; coordinate index of an element = lane % 3


def _bbox_normalize_kernel(params_ref, pts_ref, out_ref):
    """out = pts * inv_size - min_pt * inv_size, on a lane-dense (rows, 384) view.

    params_ref: SMEM f32[6] = [inv_x, inv_y, inv_z, off_x, off_y, off_z]
    pts_ref / out_ref: VMEM f32[tile_rows, 384]
    """
    # Build the (1, 384) per-lane constant rows once per grid step (tiny: 3
    # vregs of VPU work), then broadcast over the tile rows.
    lane = jax.lax.broadcasted_iota(jnp.int32, (1, LANE), 1)
    c = lane % 3
    inv = jnp.where(c == 0, params_ref[0],
                    jnp.where(c == 1, params_ref[1], params_ref[2]))
    off = jnp.where(c == 0, params_ref[3],
                    jnp.where(c == 1, params_ref[4], params_ref[5]))
    out_ref[...] = pts_ref[...] * inv - off


def bbox_normalize_pallas(pts: jax.Array, min_pt: jax.Array, max_pt: jax.Array,
                          *, block_rows: int = 512) -> jax.Array:
    """Pallas equivalent of BBox.normalize: (pts - min_pt) / (max_pt - min_pt)."""
    pts = jnp.asarray(pts, jnp.float32)
    min_pt = jnp.asarray(min_pt, jnp.float32).reshape(-1)
    max_pt = jnp.asarray(max_pt, jnp.float32).reshape(-1)
    N, D = pts.shape
    assert D == 3, "BBox.normalize expects (N, 3) points"

    # Precompute the divide outside the hot loop (3 scalars of plain-JAX work).
    inv_size = 1.0 / (max_pt - min_pt)
    offset = min_pt * inv_size
    params = jnp.concatenate([inv_size, offset]).astype(jnp.float32)  # (6,) -> SMEM

    # Lane-dense view: flatten (N,3) row-major and reshape to (rows, 384).
    total = N * D
    rows = -(-total // LANE)                        # ceil-div
    block_rows = max(8, (block_rows // 8) * 8)      # keep tile a multiple of 8 sublanes
    if rows <= block_rows:
        tile_rows = max(8, ((rows + 7) // 8) * 8)
    else:
        tile_rows = block_rows
    padded_rows = -(-rows // tile_rows) * tile_rows
    padded_total = padded_rows * LANE

    flat = pts.reshape(-1)
    if padded_total != total:
        flat = jnp.pad(flat, (0, padded_total - total))
    x = flat.reshape(padded_rows, LANE)             # pure reshape when no padding

    out = pl.pallas_call(
        _bbox_normalize_kernel,
        out_shape=jax.ShapeDtypeStruct((padded_rows, LANE), jnp.float32),
        grid=(padded_rows // tile_rows,),
        in_specs=[
            # 6 f32 normalization constants live in SMEM (no per-step DMA).
            pl.BlockSpec(memory_space=pltpu.MemorySpace.SMEM),
            pl.BlockSpec((tile_rows, LANE), lambda i: (i, 0)),
        ],
        out_specs=pl.BlockSpec((tile_rows, LANE), lambda i: (i, 0)),
        compiler_params=pltpu.CompilerParams(
            dimension_semantics=("parallel",)),
    )(params, x)

    return out.reshape(-1)[:total].reshape(N, D)


class BBoxJax:
    """JAX port of the PyTorch BBox TensorModule (parameter glue in plain JAX)."""

    def __init__(self, bbox_min: np.ndarray, bbox_max: np.ndarray):
        self.min_pt = jnp.asarray(bbox_min, dtype=jnp.float32)
        self.max_pt = jnp.asarray(bbox_max, dtype=jnp.float32)

    @classmethod
    def from_radius(cls, radius: float) -> "BBoxJax":
        bbox_max = np.array([radius, radius, radius])
        return cls(-bbox_max, bbox_max)

    @property
    def size(self) -> jax.Array:
        return self.max_pt - self.min_pt

    @property
    def mid_pt(self) -> jax.Array:
        return (self.max_pt + self.min_pt) / 2

    def scale(self, factor: float) -> None:
        mid = self.mid_pt
        self.min_pt = (self.min_pt - mid) * factor + mid
        self.max_pt = (self.max_pt - mid) * factor + mid

    def normalize(self, pts: jax.Array) -> jax.Array:
        return bbox_normalize_pallas(pts, self.min_pt, self.max_pt)

    # TODO(synk): forward() raises NotImplementedError in the reference; no semantics to translate.


if __name__ == "__main__":
    key = jax.random.PRNGKey(0)

    # Deterministic bbox parameters (module __init__ takes min/max points of dim 3).
    bbox_min = np.array([-1.0, -2.0, -0.5], dtype=np.float32)
    bbox_max = np.array([1.0, 2.0, 1.5], dtype=np.float32)
    bbox = BBoxJax(bbox_min, bbox_max)
    bbox.scale(1.5)  # exercise the in-place scale path as well

    def ref_normalize(p):
        return (p - bbox.min_pt) / (bbox.max_pt - bbox.min_pt)

    # Case 1: small point cloud, 64 x 3 (exercises padding to a full tile).
    k1, k2 = jax.random.split(key)
    pts_a = jax.random.uniform(k1, (64, 3), dtype=jnp.float32,
                               minval=-3.0, maxval=3.0)
    out_a = jax.block_until_ready(bbox.normalize(pts_a))
    np.testing.assert_allclose(np.asarray(out_a), np.asarray(ref_normalize(pts_a)),
                               rtol=1e-5, atol=1e-6)

    # Case 2: N not a multiple of anything convenient (exercises the tail/pad path)
    # plus a tiny block_rows so the grid has >1 parallel step.
    pts_b = jax.random.uniform(k2, (1000, 3), dtype=jnp.float32,
                               minval=-3.0, maxval=3.0)
    out_b = jax.block_until_ready(
        bbox_normalize_pallas(pts_b, bbox.min_pt, bbox.max_pt, block_rows=8))
    np.testing.assert_allclose(np.asarray(out_b), np.asarray(ref_normalize(pts_b)),
                               rtol=1e-5, atol=1e-6)

    print("KERNEL_OK")
</pallas_src>

<mosaic_0001>
module attributes {stable_mosaic.version = 11 : i64} {
  func.func @_bbox_normalize_kernel(%arg0: i32, %arg1: memref<6xf32, #tpu.memory_space<smem>>, %arg2: memref<8x384xf32, #tpu.memory_space<vmem>>, %arg3: memref<8x384xf32, #tpu.memory_space<vmem>>) attributes {dimension_semantics = [#tpu.dimension_semantics<parallel>], iteration_bounds = array<i64: 1>, scalar_prefetch = 0 : i64, scratch_operands = 0 : i64, tpu.core_type = #tpu.core_type<tc>, window_params = [{transform_indices = @transform_0, window_bounds = array<i64: 6>}, {transform_indices = @transform_1, window_bounds = array<i64: 8, 384>}, {transform_indices = @transform_2, window_bounds = array<i64: 8, 384>}]} {
    %0 = tpu.iota {dimensions = array<i32: 1>} : vector<1x384xi32>
    %c3_i32 = arith.constant 3 : i32
    %c0_i32 = arith.constant 0 : i32
    %1 = arith.cmpi eq, %c3_i32, %c0_i32 : i32
    %c1_i32 = arith.constant 1 : i32
    %2 = arith.select %1, %c1_i32, %c3_i32 : i32
    %3 = vector.broadcast %2 : i32 to vector<1x384xi32>
    %4 = arith.remsi %0, %3 : vector<1x384xi32>
    %c0_i32_0 = arith.constant 0 : i32
    %5 = vector.broadcast %c0_i32_0 : i32 to vector<1x384xi32>
    %6 = arith.cmpi ne, %4, %5 : vector<1x384xi32>
    %c0_i32_1 = arith.constant 0 : i32
    %7 = vector.broadcast %c0_i32_1 : i32 to vector<1x384xi32>
    %8 = arith.cmpi slt, %4, %7 : vector<1x384xi32>
    %c0_i32_2 = arith.constant 0 : i32
    %9 = arith.cmpi slt, %2, %c0_i32_2 : i32
    %10 = vector.broadcast %9 : i1 to vector<1x384xi1>
    %11 = vector.broadcast %10 : vector<1x384xi1> to vector<1x384xi1>
    %12 = arith.xori %8, %11 : vector<1x384xi1>
    %13 = arith.andi %12, %6 : vector<1x384xi1>
    %14 = vector.broadcast %2 : i32 to vector<1x384xi32>
    %15 = arith.addi %4, %14 : vector<1x384xi32>
    %16 = arith.select %13, %15, %4 : vector<1x384xi1>, vector<1x384xi32>
    %c0_i32_3 = arith.constant 0 : i32
    %17 = vector.broadcast %c0_i32_3 : i32 to vector<1x384xi32>
    %18 = arith.cmpi eq, %16, %17 : vector<1x384xi32>
    %c0 = arith.constant 0 : index
    %19 = memref.load %arg1[%c0] : memref<6xf32, #tpu.memory_space<smem>>
    %c1_i32_4 = arith.constant 1 : i32
    %20 = vector.broadcast %c1_i32_4 : i32 to vector<1x384xi32>
    %21 = arith.cmpi eq, %16, %20 : vector<1x384xi32>
    %c1 = arith.constant 1 : index
    %22 = memref.load %arg1[%c1] : memref<6xf32, #tpu.memory_space<smem>>
    %c2 = arith.constant 2 : index
    %23 = memref.load %arg1[%c2] : memref<6xf32, #tpu.memory_space<smem>>
    %24 = vector.broadcast %22 : f32 to vector<1x384xf32>
    %25 = vector.broadcast %23 : f32 to vector<1x384xf32>
    %26 = arith.select %21, %24, %25 : vector<1x384xi1>, vector<1x384xf32>
    %27 = vector.broadcast %19 : f32 to vector<1x384xf32>
    %28 = arith.select %18, %27, %26 : vector<1x384xi1>, vector<1x384xf32>
    %c0_i32_5 = arith.constant 0 : i32
    %29 = vector.broadcast %c0_i32_5 : i32 to vector<1x384xi32>
    %30 = arith.cmpi eq, %16, %29 : vector<1x384xi32>
    %c3 = arith.constant 3 : index
    %31 = memref.load %arg1[%c3] : memref<6xf32, #tpu.memory_space<smem>>
    %c1_i32_6 = arith.constant 1 : i32
    %32 = vector.broadcast %c1_i32_6 : i32 to vector<1x384xi32>
    %33 = arith.cmpi eq, %16, %32 : vector<1x384xi32>
    %c4 = arith.constant 4 : index
    %34 = memref.load %arg1[%c4] : memref<6xf32, #tpu.memory_space<smem>>
    %c5 = arith.constant 5 : index
    %35 = memref.load %arg1[%c5] : memref<6xf32, #tpu.memory_space<smem>>
    %36 = vector.broadcast %34 : f32 to vector<1x384xf32>
    %37 = vector.broadcast %35 : f32 to vector<1x384xf32>
    %38 = arith.select %33, %36, %37 : vector<1x384xi1>, vector<1x384xf32>
    %39 = vector.broadcast %31 : f32 to vector<1x384xf32>
    %40 = arith.select %30, %39, %38 : vector<1x384xi1>, vector<1x384xf32>
    %c0_7 = arith.constant 0 : index
    %c0_8 = arith.constant 0 : index
    %41 = vector.load %arg2[%c0_7, %c0_8] : memref<8x384xf32, #tpu.memory_space<vmem>>, vector<8x384xf32>
    %42 = vector.broadcast %28 : vector<1x384xf32> to vector<8x384xf32>
    %43 = arith.mulf %41, %42 : vector<8x384xf32>
    %44 = vector.broadcast %40 : vector<1x384xf32> to vector<8x384xf32>
    %45 = arith.subf %43, %44 : vector<8x384xf32>
    %c0_9 = arith.constant 0 : index
    %c0_10 = arith.constant 0 : index
    %46 = vector.load %arg3[%c0_9, %c0_10] : memref<8x384xf32, #tpu.memory_space<vmem>>, vector<8x384xf32>
    tpu.vector_store %arg3[%c0_9, %c0_10], %45 {strides = array<i32>} : memref<8x384xf32, #tpu.memory_space<vmem>>, vector<8x384xf32>,
    return
  }
  func.func @transform_0(%arg0: i32) -> i32 {
    %c0_i32 = arith.constant 0 : i32
    %c0_i32_0 = arith.constant 0 : i32
    return %c0_i32 : i32
  }
  func.func @transform_1(%arg0: i32) -> (i32, i32) {
    %c0_i32 = arith.constant 0 : i32
    %c0_i32_0 = arith.constant 0 : i32
    return %arg0, %c0_i32 : i32, i32
  }
  func.func @transform_2(%arg0: i32) -> (i32, i32) {
    %c0_i32 = arith.constant 0 : i32
    %c0_i32_0 = arith.constant 0 : i32
    return %arg0, %c0_i32 : i32, i32
  }
}

</mosaic_0001>

<bundles_post_ra>
// kernel: tpu_custom_call.1
= control target key start
LH: loop header
LB: loop body
LE: loop exit
PB: predicated region body
PF: predicated region fallthrough
CT: control target
= control target key end

     0   :  { %7 = vsyncpa [#allocation5], 0  ;;  %s252_s0 = inlined_call_operand.hbm [shape: f32[6], index: 0, kind: input, shape index: {}]   ;;  %s253_s1 = inlined_call_operand.hbm [shape: f32[8,384], index: 1, kind: input, shape index: {}]   ;;  %s254_s2 = inlined_call_operand.hbm [shape: f32[8,384], index: 2, kind: output, shape index: {}]  }
   0x1   :  { %8 = vsyncpa [#allocation3], 0 }
   0x2   :  { %9 = vsyncpa [#allocation4], 0  ;;  %s213_s9 = smov [#allocation2]   ;;  %s214_s12 = smov [#allocation6]  }
   0x3   :  { %17 = dma.hbm_to_smem %s252_s0, 16, %s213_s9, [#allocation5]  }
   0x4   :  { %s24_s13 = sshll.u32 %s214_s12, 4  ;;  %s25_s13 = int_to_ptr.vmem [resolvable:$true] %s24_s13 }
   0x5   :  { %s175_s14 = scalar_lea.vmem %s25_s13, 384  ;;  %p180_p1 = scmp.lt.s32.totalorder %s25_s13, %s25_s13 }
   0x6   :  { %p176_p0 = scmp.ne.s32.totalorder %s25_s13, %s175_s14  ;;  %p181_p2 = scmp.lt.s32.totalorder %s175_s14, %s175_s14 }
   0x8   :  { %p182_p3 = por %p181_p2, %p180_p1 }
   0xa   :  { %p183_p4 = pnand %p182_p3, %p176_p0 }
   0xc   :  { %186 = shalt.err (!%p183_p4)
}
   0xd   :  { %27 = dma.hbm_to_vmem [thread:$0]  %s253_s1, 384, %s25_s13, [#allocation3]  }
   0xe   :  { %207 = dma.done.wait [#allocation5], 16  }
   0xf   :  { %208 = vsyncadd [#allocation5], 4294967280 }
  0x10   :  { %209 = dma.done.wait [#allocation3], 384  }
  0x11   :  { %210 = vsyncadd [#allocation3], 4294966912 }
  0x12   :  { %34 = sfence }
  0x13   :  { %v35_v0 = vlaneseq  ;;  %s90_s0 = sld [smem:[#allocation2]]  ;;  %v117_v28 = vld [vmem:[#allocation6] sm:$0xff]  ;;  %v118_v35 = vld [vmem:[#allocation6 + $0x8] sm:$0xff]  ;;  %v119_v42 = vld [vmem:[#allocation6 + $0x10] sm:$0xff]  ;;  %s215_s21 = smov [#allocation7]  }
  0x14   :  { %s145_s17 = sld [smem:[#allocation2 + $0x1]]  ;;  %s135_s22 = sshll.u32 %s215_s21, 4  ;;  %s136_s22 = int_to_ptr.vmem [resolvable:$true] %s135_s22 }
  0x15   :  { %v36_v1 = vand.u32 127, %v35_v0  ;;  %s146_s18 = sld [smem:[#allocation2 + $0x2]]  ;;  %s187_s23 = scalar_lea.vmem %s136_s22, 384 }
  0x16   :  { %s147_s19 = sld [smem:[#allocation2 + $0x3]]  ;;  %p188_p5 = scmp.ne.s32.totalorder %s136_s22, %s187_s23 }
  0x17   :  { %v237_v2 = vmul.u32.u64.low 2863311531, %v36_v1  ;;  %v238_v3 = vmul.u32.u64.high 2863311531, %v36_v1, %v237_v2  ;;  %v37_v4 = vadd.s32 128, %v36_v1  ;;  %v38_v5 = vadd.s32 256, %v36_v1  ;;  %s148_s20 = sld [smem:[#allocation2 + $0x4]]  ;;  %p192_p6 = scmp.lt.s32.totalorder %s136_s22, %s136_s22 }
  0x18   :  { %s149_s1 = sld [smem:[#allocation2 + $0x5]]  ;;  %p193_p7 = scmp.lt.s32.totalorder %s187_s23, %s187_s23 }
  0x19   :  { %v240_v6 = vmul.u32.u64.low 2863311531, %v37_v4  ;;  %v241_v7 = vmul.u32.u64.high 2863311531, %v37_v4, %v240_v6  ;;  %v243_v8 = vmul.u32.u64.low 2863311531, %v38_v5  ;;  %v244_v9 = vmul.u32.u64.high 2863311531, %v38_v5, %v243_v8 }
  0x1a   :  { %v45_v10 = vshrl.u32 %v238_v3, 1  ;;  %v96_v16 = vstv %s145_s17  ;;  %v101_v18 = vstv %s90_s0  ;;  %p194_p8 = por %p193_p7, %p192_p6 }
  0x1b   :  { %v56_v12 = vshrl.u32 %v241_v7, 1  ;;  %v67_v13 = vshrl.u32 %v244_v9, 1  ;;  %v97_v17 = vstv %s146_s18 }
  0x1c   :  { %v46_v11 = vmul.u32 3, %v45_v10  ;;  %v113_v24 = vstv %s147_s19  ;;  %p195_p9 = pnand %p194_p8, %p188_p5 }
  0x1d   :  { %v57_v15 = vmul.u32 3, %v56_v12  ;;  %v68_v19 = vmul.u32 3, %v67_v13  ;;  %v108_v22 = vstv %s148_s20 }
  0x1e   :  { %v47_v14 = vsub.s32 %v36_v1, %v46_v11  ;;  %v109_v23 = vstv %s149_s1 }
  0x1f   :  { %v58_v21 = vsub.s32 %v37_v4, %v57_v15  ;;  %v69_v25 = vsub.s32 %v38_v5, %v68_v19 }
  0x20   :  { %vm72_vm0 = vcmp.ne.s32.totalorder %v47_v14, 0  ;;  %vm75_vm1 = vcmp.lt.s32.totalorder %v47_v14, 0  ;;  %v81_v20 = vadd.s32 3, %v47_v14 }
  0x21   :  { %vm78_vm2 = vmand %vm75_vm1, %vm72_vm0  ;;  %vm73_vm3 = vcmp.ne.s32.totalorder %v58_v21, 0  ;;  %vm76_vm4 = vcmp.lt.s32.totalorder %v58_v21, 0  ;;  %v82_v27 = vadd.s32 3, %v58_v21  ;;  %vm74_vm8 = vcmp.ne.s32.totalorder %v69_v25, 0 }
  0x22   :  { %v84_v26 = vsel %vm78_vm2, %v81_v20, %v47_v14  ;;  %vm79_vm7 = vmand %vm76_vm4, %vm73_vm3  ;;  %vm77_vm9 = vcmp.lt.s32.totalorder %v69_v25, 0  ;;  %v83_v32 = vadd.s32 3, %v69_v25 }
  0x23   :  { %vm87_vm5 = vcmp.eq.s32.totalorder %v84_v26, 0  ;;  %vm91_vm6 = vcmp.eq.s32.totalorder %v84_v26, 1  ;;  %v85_v31 = vsel %vm79_vm7, %v82_v27, %v58_v21  ;;  %vm80_vm10 = vmand %vm77_vm9, %vm74_vm8 }
  0x24   :  { %v98_v29 = vsel %vm91_vm6, %v96_v16, %v97_v17  ;;  %v110_v30 = vsel %vm91_vm6, %v108_v22, %v109_v23  ;;  %vm88_vm11 = vcmp.eq.s32.totalorder %v85_v31, 0  ;;  %vm92_vm12 = vcmp.eq.s32.totalorder %v85_v31, 1 }
  0x25   :  { %v102_v33 = vsel %vm87_vm5, %v101_v18, %v98_v29  ;;  %v114_v34 = vsel %vm87_vm5, %v113_v24, %v110_v30  ;;  %v99_v37 = vsel %vm92_vm12, %v96_v16, %v97_v17  ;;  %v111_v38 = vsel %vm92_vm12, %v108_v22, %v109_v23 }
  0x26   :  { %v120_v36 = vmul.f32 %v117_v28, %v102_v33  ;;  %v86_v39 = vsel %vm80_vm10, %v83_v32, %v69_v25  ;;  %v103_v40 = vsel %vm88_vm11, %v101_v18, %v99_v37  ;;  %v115_v41 = vsel %vm88_vm11, %v113_v24, %v111_v38 }
  0x27   :  { %vm89_vm13 = vcmp.eq.s32.totalorder %v86_v39, 0  ;;  %vm93_vm14 = vcmp.eq.s32.totalorder %v86_v39, 1  ;;  %v121_v44 = vmul.f32 %v118_v35, %v103_v40 }
  0x28   :  { %v123_v43 = vsub.f32 %v120_v36, %v114_v34  ;;  %v100_v45 = vsel %vm93_vm14, %v96_v16, %v97_v17  ;;  %v112_v46 = vsel %vm93_vm14, %v108_v22, %v109_v23 }
  0x29   :  { %v104_v47 = vsel %vm89_vm13, %v101_v18, %v100_v45  ;;  %v116_v48 = vsel %vm89_vm13, %v113_v24, %v112_v46  ;;  %v124_v49 = vsub.f32 %v121_v44, %v115_v41 }
  0x2a   :  { %126 = vst [vmem:[#allocation7] sm:$0xff] %v123_v43  ;;  %v122_v50 = vmul.f32 %v119_v42, %v104_v47 }
  0x2b   :  { %127 = vst [vmem:[#allocation7 + $0x8] sm:$0xff] %v124_v49 }
  0x2c   :  { %v125_v51 = vsub.f32 %v122_v50, %v116_v48 }
  0x2e   :  { %128 = vst [vmem:[#allocation7 + $0x10] sm:$0xff] %v125_v51 }
  0x2f   :  { %198 = shalt.err (!%p195_p9)
}
  0x30   :  { %138 = dma.vmem_to_hbm [thread:$0]  %s136_s22, 384, %s254_s2, [#allocation4]  }
  0x31   :  { %211 = dma.done.wait [#allocation4], 384  }
  0x32   :  { %212 = vsyncadd [#allocation4], 4294966912 }
  0x33   :  { %142 = vsyncpa [#allocation3], 1 }
  0x34   :  { %143 = vsyncpa [#allocation4], 1 }
  0x35   :  { %144 = vsyncpa [#allocation5], 1 }

</bundles_post_ra>
